<compile_context>
chip_gen: v6e
topology: v6e:2x2x1
jax: 0.10.0
libtpu: 0.0.40
codegen_flags: <defaults>
</compile_context>

<pallas_src>
import functools

import jax
import jax.numpy as jnp
from jax import lax
from jax.experimental import pallas as pl
from jax.experimental.pallas import tpu as pltpu


_TARGET_TILE_BYTES = 4 * 1024 * 1024   # ~4 MiB output tile per grid step
_VMEM_LIMIT_BYTES = 32 * 1024 * 1024   # safe scoped limit on v5e / v6e / v7x


def _apply_power(a, power):
    """|diff| ** power with small integer powers special-cased (general pow
    lowers to exp(power * log(a)) -> 2 extra EUP transcendentals + log(0))."""
    p = float(power)
    if p == 1.0:
        return a
    if p == 2.0:
        return a * a
    if p == 3.0:
        return a * a * a
    if p == 4.0:
        a2 = a * a
        return a2 * a2
    return a ** p


def _inv(x):
    """EUP approximate reciprocal + one Newton step (~f32 accurate for the
    softmax denominators, which lie in [1, n]).  Applied only to the small
    per-row sums so the n^2 hot path stays multiply-only."""
    r = pl.reciprocal(x, approx=True)
    return r * (2.0 - x * r)


# ---------------------------------------------------------------------------
# Kernel 1: small n (< 128).  Lane-dense flattened (TB, n*n) output.
# ---------------------------------------------------------------------------
def _softsort_flat_kernel(scores_ref, sorted_ref, out_ref, *, tau, power, hard):
    # scores_ref, sorted_ref : (TB, n) f32   (sorted_ref = descending sort)
    # out_ref                : (TB, n*n) f32, out[t, i*n + j] = P_hat[t, i, j]
    s = scores_ref[...]
    d = sorted_ref[...]
    tb, n = s.shape
    neg_inv_tau = -1.0 / float(tau)

    if hard:
        # argmax of the softmax == argmin of |diff|^p: build the one-hot
        # directly (no exp / sum / divide).  Ties resolve to lowest column.
        j_idx = lax.broadcasted_iota(jnp.int32, (tb, n), 1)
        pieces = []
        for i in range(n):
            a = _apply_power(jnp.abs(s - d[:, i:i + 1]), power)
            a_min = jnp.min(a, axis=-1, keepdims=True)
            first = jnp.min(jnp.where(a == a_min, j_idx, n),
                            axis=-1, keepdims=True)
            pieces.append((j_idx == first).astype(out_ref.dtype))
        out_ref[...] = jnp.concatenate(pieces, axis=-1)
        return

    # Soft path: single fused per-segment pass.
    e_pieces = []
    sums = []
    for i in range(n):
        a = _apply_power(jnp.abs(s - d[:, i:i + 1]), power)
        # max_j(logits) == 0 exactly for every row (each sorted value comes
        # from the row itself), so exp() is safe without max subtraction.
        e = jnp.exp(a * neg_inv_tau)
        e_pieces.append(e)
        sums.append(jnp.sum(e, axis=-1, keepdims=True))

    inv = _inv(jnp.concatenate(sums, axis=-1))          # (TB, n), one EUP pass
    out_pieces = [e_pieces[i] * inv[:, i:i + 1] for i in range(n)]
    out_ref[...] = jnp.concatenate(out_pieces, axis=-1).astype(out_ref.dtype)


# ---------------------------------------------------------------------------
# Kernel 2: general path ((TB, n, n) blocks), used for n >= 128.
# ---------------------------------------------------------------------------
def _softsort_3d_kernel(scores_ref, sorted_ref, out_ref, *, tau, power, hard):
    # scores_ref : (TB, 1, n),  sorted_ref : (TB, 1, n),  out_ref : (TB, n, n)
    row = scores_ref[...]                                # (TB, 1, n)
    # Lane-dense operand; the lane->sublane swap touches only TB*n elements.
    col = jnp.swapaxes(sorted_ref[...], 1, 2)            # (TB, n, 1)
    n = row.shape[-1]
    neg_inv_tau = -1.0 / float(tau)

    a = _apply_power(jnp.abs(row - col), power)          # (TB, n, n)

    if hard:
        j_idx = lax.broadcasted_iota(jnp.int32, a.shape, 2)
        a_min = jnp.min(a, axis=-1, keepdims=True)
        first = jnp.min(jnp.where(a == a_min, j_idx, n), axis=-1, keepdims=True)
        p = (j_idx == first).astype(out_ref.dtype)
    else:
        e = jnp.exp(a * neg_inv_tau)                     # row max is exactly 0
        denom = jnp.sum(e, axis=-1, keepdims=True)
        p = (e * _inv(denom)).astype(out_ref.dtype)

    out_ref[...] = p


def _choose_tb(batch, n, sublane_align):
    """Batch rows per grid step: ~4 MiB of output per step (amortizes the
    ~0.35us/step grid overhead), at least ~4 grid steps when the batch allows
    (v7x megacore), and multiple-of-8 sublane alignment for the 2D flat path."""
    row_bytes = 4 * n * n
    tb = max(1, _TARGET_TILE_BYTES // row_bytes)
    if batch >= 32:
        tb = min(tb, pl.cdiv(batch, 4))          # keep >= ~4 steps for 2 TCs
    if tb >= batch:
        return batch                             # block dim == full array dim
    if sublane_align:
        tb = max(8, (tb // 8) * 8)
        if tb >= batch:
            return batch
    return tb


def softsort(scores, tau=1.0, hard=False, power=1.0):
    """Pallas SoftSort forward.  scores: (B, n) -> P_hat: (B, n, n) float32."""
    if scores.ndim != 2:
        raise ValueError(f"scores must be rank-2 (batch, n), got {scores.shape}")
    B, n = scores.shape
    tau = float(tau)
    power = float(power)

    scores = scores.astype(jnp.float32)
    # Hoisted out of the kernel: the descending sort is a tiny (B, n) XLA op.
    sorted_desc = -jnp.sort(-scores, axis=-1)

    use_flat = n < 128
    tb = _choose_tb(B, n, sublane_align=use_flat)
    grid = (pl.cdiv(B, tb),)                     # ragged last block is masked
    cparams = pltpu.CompilerParams(
        dimension_semantics=("parallel",),       # megacore sharding on v7x
        vmem_limit_bytes=_VMEM_LIMIT_BYTES)

    if use_flat:
        kernel = functools.partial(_softsort_flat_kernel,
                                   tau=tau, power=power, hard=bool(hard))
        out = pl.pallas_call(
            kernel,
            out_shape=jax.ShapeDtypeStruct((B, n * n), jnp.float32),
            grid=grid,
            in_specs=[pl.BlockSpec((tb, n), lambda b: (b, 0)),
                      pl.BlockSpec((tb, n), lambda b: (b, 0))],
            out_specs=pl.BlockSpec((tb, n * n), lambda b: (b, 0)),
            compiler_params=cparams,
        )(scores, sorted_desc)
        return out.reshape(B, n, n)

    kernel = functools.partial(_softsort_3d_kernel,
                               tau=tau, power=power, hard=bool(hard))
    out = pl.pallas_call(
        kernel,
        out_shape=jax.ShapeDtypeStruct((B, n, n), jnp.float32),
        grid=grid,
        in_specs=[pl.BlockSpec((tb, 1, n), lambda b: (b, 0, 0)),
                  pl.BlockSpec((tb, 1, n), lambda b: (b, 0, 0))],
        out_specs=pl.BlockSpec((tb, n, n), lambda b: (b, 0, 0)),
        compiler_params=cparams,
    )(scores.reshape(B, 1, n), sorted_desc.reshape(B, 1, n))
    return out


def softsort_ref(scores, tau=1.0, power=1.0):
    """Pure-JAX reference mirroring the torch forward (hard=False)."""
    s = scores.astype(jnp.float32)[..., None]          # (B, n, 1)
    sorted_ = -jnp.sort(-s, axis=1)                    # descending along dim 1
    pd = -(jnp.abs(jnp.swapaxes(s, 1, 2) - sorted_) ** power) / tau
    return jax.nn.softmax(pd, axis=-1)


if __name__ == "__main__":
    key = jax.random.PRNGKey(0)
    B, n = 2, 16
    scores = jax.random.normal(key, (B, n), dtype=jnp.float32)

    # Soft path (fused lane-dense flat kernel).
    out = jax.block_until_ready(softsort(scores, tau=1.0, hard=False, power=1.0))
    ref = softsort_ref(scores, tau=1.0, power=1.0)
    assert out.shape == (B, n, n)
    assert jnp.allclose(out, ref, atol=1e-5, rtol=1e-5), (
        f"soft: max abs err = {jnp.max(jnp.abs(out - ref))}")

    # Non-default tau / pow (special-cased square).
    out2 = jax.block_until_ready(softsort(scores, tau=0.5, hard=False, power=2.0))
    ref2 = softsort_ref(scores, tau=0.5, power=2.0)
    assert jnp.allclose(out2, ref2, atol=1e-5, rtol=1e-5), (
        f"pow=2: max abs err = {jnp.max(jnp.abs(out2 - ref2))}")

    # Hard path (flat lane-dense argmin fast path; forward value of the
    # straight-through trick).
    hard_out = jax.block_until_ready(softsort(scores, tau=1.0, hard=True, power=1.0))
    assert hard_out.shape == (B, n, n)
    assert jnp.allclose(jnp.sum(hard_out, axis=-1), 1.0)
    assert jnp.array_equal(jnp.argmax(hard_out, axis=-1), jnp.argmax(ref, axis=-1))

    print("KERNEL_OK")
</pallas_src>

<mosaic_0001>
module attributes {stable_mosaic.version = 11 : i64} {
  func.func @_softsort_flat_kernel(%arg0: i32, %arg1: memref<2x16xf32, #tpu.memory_space<vmem>>, %arg2: memref<2x16xf32, #tpu.memory_space<vmem>>, %arg3: memref<2x256xf32, #tpu.memory_space<vmem>>) attributes {dimension_semantics = [#tpu.dimension_semantics<parallel>], iteration_bounds = array<i64: 1>, scalar_prefetch = 0 : i64, scratch_operands = 0 : i64, tpu.core_type = #tpu.core_type<tc>, window_params = [{transform_indices = @transform_0, window_bounds = array<i64: 2, 16>}, {transform_indices = @transform_1, window_bounds = array<i64: 2, 16>}, {transform_indices = @transform_2, window_bounds = array<i64: 2, 256>}]} {
    %c0 = arith.constant 0 : index
    %c0_0 = arith.constant 0 : index
    %0 = vector.load %arg1[%c0, %c0_0] : memref<2x16xf32, #tpu.memory_space<vmem>>, vector<2x16xf32>
    %c0_1 = arith.constant 0 : index
    %c0_2 = arith.constant 0 : index
    %1 = vector.load %arg2[%c0_1, %c0_2] : memref<2x16xf32, #tpu.memory_space<vmem>>, vector<2x16xf32>
    %2 = vector.extract_strided_slice %1 {offsets = [0, 0], sizes = [2, 1], strides = [1, 1]} : vector<2x16xf32> to vector<2x1xf32>
    %3 = vector.broadcast %2 : vector<2x1xf32> to vector<2x16xf32>
    %4 = arith.subf %0, %3 : vector<2x16xf32>
    %5 = math.absf %4 : vector<2x16xf32>
    %cst = arith.constant -1.000000e+00 : f32
    %6 = vector.broadcast %cst : f32 to vector<2x16xf32>
    %7 = arith.mulf %5, %6 : vector<2x16xf32>
    %8 = math.exp %7 : vector<2x16xf32>
    %cst_3 = arith.constant dense<0.000000e+00> : vector<2xf32>
    %9 = vector.multi_reduction <add>, %8, %cst_3 [1] : vector<2x16xf32> to vector<2xf32>
    %10 = vector.shape_cast %9 : vector<2xf32> to vector<2x1xf32>
    %11 = vector.extract_strided_slice %1 {offsets = [0, 1], sizes = [2, 1], strides = [1, 1]} : vector<2x16xf32> to vector<2x1xf32>
    %12 = vector.broadcast %11 : vector<2x1xf32> to vector<2x16xf32>
    %13 = arith.subf %0, %12 : vector<2x16xf32>
    %14 = math.absf %13 : vector<2x16xf32>
    %cst_4 = arith.constant -1.000000e+00 : f32
    %15 = vector.broadcast %cst_4 : f32 to vector<2x16xf32>
    %16 = arith.mulf %14, %15 : vector<2x16xf32>
    %17 = math.exp %16 : vector<2x16xf32>
    %cst_5 = arith.constant dense<0.000000e+00> : vector<2xf32>
    %18 = vector.multi_reduction <add>, %17, %cst_5 [1] : vector<2x16xf32> to vector<2xf32>
    %19 = vector.shape_cast %18 : vector<2xf32> to vector<2x1xf32>
    %20 = vector.extract_strided_slice %1 {offsets = [0, 2], sizes = [2, 1], strides = [1, 1]} : vector<2x16xf32> to vector<2x1xf32>
    %21 = vector.broadcast %20 : vector<2x1xf32> to vector<2x16xf32>
    %22 = arith.subf %0, %21 : vector<2x16xf32>
    %23 = math.absf %22 : vector<2x16xf32>
    %cst_6 = arith.constant -1.000000e+00 : f32
    %24 = vector.broadcast %cst_6 : f32 to vector<2x16xf32>
    %25 = arith.mulf %23, %24 : vector<2x16xf32>
    %26 = math.exp %25 : vector<2x16xf32>
    %cst_7 = arith.constant dense<0.000000e+00> : vector<2xf32>
    %27 = vector.multi_reduction <add>, %26, %cst_7 [1] : vector<2x16xf32> to vector<2xf32>
    %28 = vector.shape_cast %27 : vector<2xf32> to vector<2x1xf32>
    %29 = vector.extract_strided_slice %1 {offsets = [0, 3], sizes = [2, 1], strides = [1, 1]} : vector<2x16xf32> to vector<2x1xf32>
    %30 = vector.broadcast %29 : vector<2x1xf32> to vector<2x16xf32>
    %31 = arith.subf %0, %30 : vector<2x16xf32>
    %32 = math.absf %31 : vector<2x16xf32>
    %cst_8 = arith.constant -1.000000e+00 : f32
    %33 = vector.broadcast %cst_8 : f32 to vector<2x16xf32>
    %34 = arith.mulf %32, %33 : vector<2x16xf32>
    %35 = math.exp %34 : vector<2x16xf32>
    %cst_9 = arith.constant dense<0.000000e+00> : vector<2xf32>
    %36 = vector.multi_reduction <add>, %35, %cst_9 [1] : vector<2x16xf32> to vector<2xf32>
    %37 = vector.shape_cast %36 : vector<2xf32> to vector<2x1xf32>
    %38 = vector.extract_strided_slice %1 {offsets = [0, 4], sizes = [2, 1], strides = [1, 1]} : vector<2x16xf32> to vector<2x1xf32>
    %39 = vector.broadcast %38 : vector<2x1xf32> to vector<2x16xf32>
    %40 = arith.subf %0, %39 : vector<2x16xf32>
    %41 = math.absf %40 : vector<2x16xf32>
    %cst_10 = arith.constant -1.000000e+00 : f32
    %42 = vector.broadcast %cst_10 : f32 to vector<2x16xf32>
    %43 = arith.mulf %41, %42 : vector<2x16xf32>
    %44 = math.exp %43 : vector<2x16xf32>
    %cst_11 = arith.constant dense<0.000000e+00> : vector<2xf32>
    %45 = vector.multi_reduction <add>, %44, %cst_11 [1] : vector<2x16xf32> to vector<2xf32>
    %46 = vector.shape_cast %45 : vector<2xf32> to vector<2x1xf32>
    %47 = vector.extract_strided_slice %1 {offsets = [0, 5], sizes = [2, 1], strides = [1, 1]} : vector<2x16xf32> to vector<2x1xf32>
    %48 = vector.broadcast %47 : vector<2x1xf32> to vector<2x16xf32>
    %49 = arith.subf %0, %48 : vector<2x16xf32>
    %50 = math.absf %49 : vector<2x16xf32>
    %cst_12 = arith.constant -1.000000e+00 : f32
    %51 = vector.broadcast %cst_12 : f32 to vector<2x16xf32>
    %52 = arith.mulf %50, %51 : vector<2x16xf32>
    %53 = math.exp %52 : vector<2x16xf32>
    %cst_13 = arith.constant dense<0.000000e+00> : vector<2xf32>
    %54 = vector.multi_reduction <add>, %53, %cst_13 [1] : vector<2x16xf32> to vector<2xf32>
    %55 = vector.shape_cast %54 : vector<2xf32> to vector<2x1xf32>
    %56 = vector.extract_strided_slice %1 {offsets = [0, 6], sizes = [2, 1], strides = [1, 1]} : vector<2x16xf32> to vector<2x1xf32>
    %57 = vector.broadcast %56 : vector<2x1xf32> to vector<2x16xf32>
    %58 = arith.subf %0, %57 : vector<2x16xf32>
    %59 = math.absf %58 : vector<2x16xf32>
    %cst_14 = arith.constant -1.000000e+00 : f32
    %60 = vector.broadcast %cst_14 : f32 to vector<2x16xf32>
    %61 = arith.mulf %59, %60 : vector<2x16xf32>
    %62 = math.exp %61 : vector<2x16xf32>
    %cst_15 = arith.constant dense<0.000000e+00> : vector<2xf32>
    %63 = vector.multi_reduction <add>, %62, %cst_15 [1] : vector<2x16xf32> to vector<2xf32>
    %64 = vector.shape_cast %63 : vector<2xf32> to vector<2x1xf32>
    %65 = vector.extract_strided_slice %1 {offsets = [0, 7], sizes = [2, 1], strides = [1, 1]} : vector<2x16xf32> to vector<2x1xf32>
    %66 = vector.broadcast %65 : vector<2x1xf32> to vector<2x16xf32>
    %67 = arith.subf %0, %66 : vector<2x16xf32>
    %68 = math.absf %67 : vector<2x16xf32>
    %cst_16 = arith.constant -1.000000e+00 : f32
    %69 = vector.broadcast %cst_16 : f32 to vector<2x16xf32>
    %70 = arith.mulf %68, %69 : vector<2x16xf32>
    %71 = math.exp %70 : vector<2x16xf32>
    %cst_17 = arith.constant dense<0.000000e+00> : vector<2xf32>
    %72 = vector.multi_reduction <add>, %71, %cst_17 [1] : vector<2x16xf32> to vector<2xf32>
    %73 = vector.shape_cast %72 : vector<2xf32> to vector<2x1xf32>
    %74 = vector.extract_strided_slice %1 {offsets = [0, 8], sizes = [2, 1], strides = [1, 1]} : vector<2x16xf32> to vector<2x1xf32>
    %75 = vector.broadcast %74 : vector<2x1xf32> to vector<2x16xf32>
    %76 = arith.subf %0, %75 : vector<2x16xf32>
    %77 = math.absf %76 : vector<2x16xf32>
    %cst_18 = arith.constant -1.000000e+00 : f32
    %78 = vector.broadcast %cst_18 : f32 to vector<2x16xf32>
    %79 = arith.mulf %77, %78 : vector<2x16xf32>
    %80 = math.exp %79 : vector<2x16xf32>
    %cst_19 = arith.constant dense<0.000000e+00> : vector<2xf32>
    %81 = vector.multi_reduction <add>, %80, %cst_19 [1] : vector<2x16xf32> to vector<2xf32>
    %82 = vector.shape_cast %81 : vector<2xf32> to vector<2x1xf32>
    %83 = vector.extract_strided_slice %1 {offsets = [0, 9], sizes = [2, 1], strides = [1, 1]} : vector<2x16xf32> to vector<2x1xf32>
    %84 = vector.broadcast %83 : vector<2x1xf32> to vector<2x16xf32>
    %85 = arith.subf %0, %84 : vector<2x16xf32>
    %86 = math.absf %85 : vector<2x16xf32>
    %cst_20 = arith.constant -1.000000e+00 : f32
    %87 = vector.broadcast %cst_20 : f32 to vector<2x16xf32>
    %88 = arith.mulf %86, %87 : vector<2x16xf32>
    %89 = math.exp %88 : vector<2x16xf32>
    %cst_21 = arith.constant dense<0.000000e+00> : vector<2xf32>
    %90 = vector.multi_reduction <add>, %89, %cst_21 [1] : vector<2x16xf32> to vector<2xf32>
    %91 = vector.shape_cast %90 : vector<2xf32> to vector<2x1xf32>
    %92 = vector.extract_strided_slice %1 {offsets = [0, 10], sizes = [2, 1], strides = [1, 1]} : vector<2x16xf32> to vector<2x1xf32>
    %93 = vector.broadcast %92 : vector<2x1xf32> to vector<2x16xf32>
    %94 = arith.subf %0, %93 : vector<2x16xf32>
    %95 = math.absf %94 : vector<2x16xf32>
    %cst_22 = arith.constant -1.000000e+00 : f32
    %96 = vector.broadcast %cst_22 : f32 to vector<2x16xf32>
    %97 = arith.mulf %95, %96 : vector<2x16xf32>
    %98 = math.exp %97 : vector<2x16xf32>
    %cst_23 = arith.constant dense<0.000000e+00> : vector<2xf32>
    %99 = vector.multi_reduction <add>, %98, %cst_23 [1] : vector<2x16xf32> to vector<2xf32>
    %100 = vector.shape_cast %99 : vector<2xf32> to vector<2x1xf32>
    %101 = vector.extract_strided_slice %1 {offsets = [0, 11], sizes = [2, 1], strides = [1, 1]} : vector<2x16xf32> to vector<2x1xf32>
    %102 = vector.broadcast %101 : vector<2x1xf32> to vector<2x16xf32>
    %103 = arith.subf %0, %102 : vector<2x16xf32>
    %104 = math.absf %103 : vector<2x16xf32>
    %cst_24 = arith.constant -1.000000e+00 : f32
    %105 = vector.broadcast %cst_24 : f32 to vector<2x16xf32>
    %106 = arith.mulf %104, %105 : vector<2x16xf32>
    %107 = math.exp %106 : vector<2x16xf32>
    %cst_25 = arith.constant dense<0.000000e+00> : vector<2xf32>
    %108 = vector.multi_reduction <add>, %107, %cst_25 [1] : vector<2x16xf32> to vector<2xf32>
    %109 = vector.shape_cast %108 : vector<2xf32> to vector<2x1xf32>
    %110 = vector.extract_strided_slice %1 {offsets = [0, 12], sizes = [2, 1], strides = [1, 1]} : vector<2x16xf32> to vector<2x1xf32>
    %111 = vector.broadcast %110 : vector<2x1xf32> to vector<2x16xf32>
    %112 = arith.subf %0, %111 : vector<2x16xf32>
    %113 = math.absf %112 : vector<2x16xf32>
    %cst_26 = arith.constant -1.000000e+00 : f32
    %114 = vector.broadcast %cst_26 : f32 to vector<2x16xf32>
    %115 = arith.mulf %113, %114 : vector<2x16xf32>
    %116 = math.exp %115 : vector<2x16xf32>
    %cst_27 = arith.constant dense<0.000000e+00> : vector<2xf32>
    %117 = vector.multi_reduction <add>, %116, %cst_27 [1] : vector<2x16xf32> to vector<2xf32>
    %118 = vector.shape_cast %117 : vector<2xf32> to vector<2x1xf32>
    %119 = vector.extract_strided_slice %1 {offsets = [0, 13], sizes = [2, 1], strides = [1, 1]} : vector<2x16xf32> to vector<2x1xf32>
    %120 = vector.broadcast %119 : vector<2x1xf32> to vector<2x16xf32>
    %121 = arith.subf %0, %120 : vector<2x16xf32>
    %122 = math.absf %121 : vector<2x16xf32>
    %cst_28 = arith.constant -1.000000e+00 : f32
    %123 = vector.broadcast %cst_28 : f32 to vector<2x16xf32>
    %124 = arith.mulf %122, %123 : vector<2x16xf32>
    %125 = math.exp %124 : vector<2x16xf32>
    %cst_29 = arith.constant dense<0.000000e+00> : vector<2xf32>
    %126 = vector.multi_reduction <add>, %125, %cst_29 [1] : vector<2x16xf32> to vector<2xf32>
    %127 = vector.shape_cast %126 : vector<2xf32> to vector<2x1xf32>
    %128 = vector.extract_strided_slice %1 {offsets = [0, 14], sizes = [2, 1], strides = [1, 1]} : vector<2x16xf32> to vector<2x1xf32>
    %129 = vector.broadcast %128 : vector<2x1xf32> to vector<2x16xf32>
    %130 = arith.subf %0, %129 : vector<2x16xf32>
    %131 = math.absf %130 : vector<2x16xf32>
    %cst_30 = arith.constant -1.000000e+00 : f32
    %132 = vector.broadcast %cst_30 : f32 to vector<2x16xf32>
    %133 = arith.mulf %131, %132 : vector<2x16xf32>
    %134 = math.exp %133 : vector<2x16xf32>
    %cst_31 = arith.constant dense<0.000000e+00> : vector<2xf32>
    %135 = vector.multi_reduction <add>, %134, %cst_31 [1] : vector<2x16xf32> to vector<2xf32>
    %136 = vector.shape_cast %135 : vector<2xf32> to vector<2x1xf32>
    %137 = vector.extract_strided_slice %1 {offsets = [0, 15], sizes = [2, 1], strides = [1, 1]} : vector<2x16xf32> to vector<2x1xf32>
    %138 = vector.broadcast %137 : vector<2x1xf32> to vector<2x16xf32>
    %139 = arith.subf %0, %138 : vector<2x16xf32>
    %140 = math.absf %139 : vector<2x16xf32>
    %cst_32 = arith.constant -1.000000e+00 : f32
    %141 = vector.broadcast %cst_32 : f32 to vector<2x16xf32>
    %142 = arith.mulf %140, %141 : vector<2x16xf32>
    %143 = math.exp %142 : vector<2x16xf32>
    %cst_33 = arith.constant dense<0.000000e+00> : vector<2xf32>
    %144 = vector.multi_reduction <add>, %143, %cst_33 [1] : vector<2x16xf32> to vector<2xf32>
    %145 = vector.shape_cast %144 : vector<2xf32> to vector<2x1xf32>
    %146 = tpu.concatenate %10, %19, %28, %37, %46, %55, %64, %73, %82, %91, %100, %109, %118, %127, %136, %145 in 1 : vector<2x1xf32>, vector<2x1xf32>, vector<2x1xf32>, vector<2x1xf32>, vector<2x1xf32>, vector<2x1xf32>, vector<2x1xf32>, vector<2x1xf32>, vector<2x1xf32>, vector<2x1xf32>, vector<2x1xf32>, vector<2x1xf32>, vector<2x1xf32>, vector<2x1xf32>, vector<2x1xf32>, vector<2x1xf32> -> vector<2x16xf32>
    %147 = tpu.reciprocal %146 {approx = true} : vector<2x16xf32> -> vector<2x16xf32>
    %148 = arith.mulf %146, %147 : vector<2x16xf32>
    %cst_34 = arith.constant 2.000000e+00 : f32
    %149 = vector.broadcast %cst_34 : f32 to vector<2x16xf32>
    %150 = arith.subf %149, %148 : vector<2x16xf32>
    %151 = arith.mulf %147, %150 : vector<2x16xf32>
    %152 = vector.extract_strided_slice %151 {offsets = [0, 0], sizes = [2, 1], strides = [1, 1]} : vector<2x16xf32> to vector<2x1xf32>
    %153 = vector.broadcast %152 : vector<2x1xf32> to vector<2x16xf32>
    %154 = arith.mulf %8, %153 : vector<2x16xf32>
    %155 = vector.extract_strided_slice %151 {offsets = [0, 1], sizes = [2, 1], strides = [1, 1]} : vector<2x16xf32> to vector<2x1xf32>
    %156 = vector.broadcast %155 : vector<2x1xf32> to vector<2x16xf32>
    %157 = arith.mulf %17, %156 : vector<2x16xf32>
    %158 = vector.extract_strided_slice %151 {offsets = [0, 2], sizes = [2, 1], strides = [1, 1]} : vector<2x16xf32> to vector<2x1xf32>
    %159 = vector.broadcast %158 : vector<2x1xf32> to vector<2x16xf32>
    %160 = arith.mulf %26, %159 : vector<2x16xf32>
    %161 = vector.extract_strided_slice %151 {offsets = [0, 3], sizes = [2, 1], strides = [1, 1]} : vector<2x16xf32> to vector<2x1xf32>
    %162 = vector.broadcast %161 : vector<2x1xf32> to vector<2x16xf32>
    %163 = arith.mulf %35, %162 : vector<2x16xf32>
    %164 = vector.extract_strided_slice %151 {offsets = [0, 4], sizes = [2, 1], strides = [1, 1]} : vector<2x16xf32> to vector<2x1xf32>
    %165 = vector.broadcast %164 : vector<2x1xf32> to vector<2x16xf32>
    %166 = arith.mulf %44, %165 : vector<2x16xf32>
    %167 = vector.extract_strided_slice %151 {offsets = [0, 5], sizes = [2, 1], strides = [1, 1]} : vector<2x16xf32> to vector<2x1xf32>
    %168 = vector.broadcast %167 : vector<2x1xf32> to vector<2x16xf32>
    %169 = arith.mulf %53, %168 : vector<2x16xf32>
    %170 = vector.extract_strided_slice %151 {offsets = [0, 6], sizes = [2, 1], strides = [1, 1]} : vector<2x16xf32> to vector<2x1xf32>
    %171 = vector.broadcast %170 : vector<2x1xf32> to vector<2x16xf32>
    %172 = arith.mulf %62, %171 : vector<2x16xf32>
    %173 = vector.extract_strided_slice %151 {offsets = [0, 7], sizes = [2, 1], strides = [1, 1]} : vector<2x16xf32> to vector<2x1xf32>
    %174 = vector.broadcast %173 : vector<2x1xf32> to vector<2x16xf32>
    %175 = arith.mulf %71, %174 : vector<2x16xf32>
    %176 = vector.extract_strided_slice %151 {offsets = [0, 8], sizes = [2, 1], strides = [1, 1]} : vector<2x16xf32> to vector<2x1xf32>
    %177 = vector.broadcast %176 : vector<2x1xf32> to vector<2x16xf32>
    %178 = arith.mulf %80, %177 : vector<2x16xf32>
    %179 = vector.extract_strided_slice %151 {offsets = [0, 9], sizes = [2, 1], strides = [1, 1]} : vector<2x16xf32> to vector<2x1xf32>
    %180 = vector.broadcast %179 : vector<2x1xf32> to vector<2x16xf32>
    %181 = arith.mulf %89, %180 : vector<2x16xf32>
    %182 = vector.extract_strided_slice %151 {offsets = [0, 10], sizes = [2, 1], strides = [1, 1]} : vector<2x16xf32> to vector<2x1xf32>
    %183 = vector.broadcast %182 : vector<2x1xf32> to vector<2x16xf32>
    %184 = arith.mulf %98, %183 : vector<2x16xf32>
    %185 = vector.extract_strided_slice %151 {offsets = [0, 11], sizes = [2, 1], strides = [1, 1]} : vector<2x16xf32> to vector<2x1xf32>
    %186 = vector.broadcast %185 : vector<2x1xf32> to vector<2x16xf32>
    %187 = arith.mulf %107, %186 : vector<2x16xf32>
    %188 = vector.extract_strided_slice %151 {offsets = [0, 12], sizes = [2, 1], strides = [1, 1]} : vector<2x16xf32> to vector<2x1xf32>
    %189 = vector.broadcast %188 : vector<2x1xf32> to vector<2x16xf32>
    %190 = arith.mulf %116, %189 : vector<2x16xf32>
    %191 = vector.extract_strided_slice %151 {offsets = [0, 13], sizes = [2, 1], strides = [1, 1]} : vector<2x16xf32> to vector<2x1xf32>
    %192 = vector.broadcast %191 : vector<2x1xf32> to vector<2x16xf32>
    %193 = arith.mulf %125, %192 : vector<2x16xf32>
    %194 = vector.extract_strided_slice %151 {offsets = [0, 14], sizes = [2, 1], strides = [1, 1]} : vector<2x16xf32> to vector<2x1xf32>
    %195 = vector.broadcast %194 : vector<2x1xf32> to vector<2x16xf32>
    %196 = arith.mulf %134, %195 : vector<2x16xf32>
    %197 = vector.extract_strided_slice %151 {offsets = [0, 15], sizes = [2, 1], strides = [1, 1]} : vector<2x16xf32> to vector<2x1xf32>
    %198 = vector.broadcast %197 : vector<2x1xf32> to vector<2x16xf32>
    %199 = arith.mulf %143, %198 : vector<2x16xf32>
    %200 = tpu.concatenate %154, %157, %160, %163, %166, %169, %172, %175, %178, %181, %184, %187, %190, %193, %196, %199 in 1 : vector<2x16xf32>, vector<2x16xf32>, vector<2x16xf32>, vector<2x16xf32>, vector<2x16xf32>, vector<2x16xf32>, vector<2x16xf32>, vector<2x16xf32>, vector<2x16xf32>, vector<2x16xf32>, vector<2x16xf32>, vector<2x16xf32>, vector<2x16xf32>, vector<2x16xf32>, vector<2x16xf32>, vector<2x16xf32> -> vector<2x256xf32>
    %c0_35 = arith.constant 0 : index
    %c0_36 = arith.constant 0 : index
    %201 = vector.load %arg3[%c0_35, %c0_36] : memref<2x256xf32, #tpu.memory_space<vmem>>, vector<2x256xf32>
    tpu.vector_store %arg3[%c0_35, %c0_36], %200 {strides = array<i32>} : memref<2x256xf32, #tpu.memory_space<vmem>>, vector<2x256xf32>,
    return
  }
  func.func @transform_0(%arg0: i32) -> (i32, i32) {
    %c0_i32 = arith.constant 0 : i32
    %c0_i32_0 = arith.constant 0 : i32
    return %arg0, %c0_i32 : i32, i32
  }
  func.func @transform_1(%arg0: i32) -> (i32, i32) {
    %c0_i32 = arith.constant 0 : i32
    %c0_i32_0 = arith.constant 0 : i32
    return %arg0, %c0_i32 : i32, i32
  }
  func.func @transform_2(%arg0: i32) -> (i32, i32) {
    %c0_i32 = arith.constant 0 : i32
    %c0_i32_0 = arith.constant 0 : i32
    return %arg0, %c0_i32 : i32, i32
  }
}

</mosaic_0001>

<bundles_post_ra>
// kernel: tpu_custom_call.1
= control target key start
LH: loop header
LB: loop body
LE: loop exit
PB: predicated region body
PF: predicated region fallthrough
CT: control target
= control target key end

     0   :  { %7 = vsyncpa [#allocation3], 0  ;;  %s813_s0 = inlined_call_operand.hbm [shape: f32[2,16], index: 0, kind: input, shape index: {}]   ;;  %s814_s1 = inlined_call_operand.hbm [shape: f32[2,16], index: 1, kind: input, shape index: {}]   ;;  %s815_s2 = inlined_call_operand.hbm [shape: f32[2,256], index: 2, kind: output, shape index: {}]  }
   0x1   :  { %8 = vsyncpa [#allocation6], 0 }
   0x2   :  { %9 = vsyncpa [#allocation4], 0  ;;  %s612_s9 = smov [#allocation2]   ;;  %s613_s11 = smov [#allocation5]  }
   0x3   :  { %s16_s10 = sshll.u32 %s612_s9, 4  ;;  %s26_s12 = sshll.u32 %s613_s11, 4  ;;  %s17_s10 = int_to_ptr.vmem [resolvable:$true] %s16_s10  ;;  %s27_s12 = int_to_ptr.vmem [resolvable:$true] %s26_s12 }
   0x4   :  { %s554_s13 = scalar_lea.vmem %s17_s10, 32  ;;  %p559_p1 = scmp.lt.s32.totalorder %s17_s10, %s17_s10 }
   0x5   :  { %p555_p0 = scmp.ne.s32.totalorder %s17_s10, %s554_s13  ;;  %p560_p2 = scmp.lt.s32.totalorder %s554_s13, %s554_s13 }
   0x7   :  { %p561_p3 = por %p560_p2, %p559_p1 }
   0x9   :  { %p562_p4 = pnand %p561_p3, %p555_p0 }
   0xb   :  { %565 = shalt.err (!%p562_p4)
}
   0xc   :  { %19 = dma.hbm_to_vmem [thread:$0]  %s813_s0, 32, %s17_s10, [#allocation3]  }
   0xd   :  { %s574_s16 = scalar_lea.vmem %s27_s12, 32  ;;  %p579_p6 = scmp.lt.s32.totalorder %s27_s12, %s27_s12 }
   0xe   :  { %p575_p5 = scmp.ne.s32.totalorder %s27_s12, %s574_s16  ;;  %p580_p7 = scmp.lt.s32.totalorder %s574_s16, %s574_s16 }
  0x10   :  { %p581_p8 = por %p580_p7, %p579_p6 }
  0x12   :  { %p582_p9 = pnand %p581_p8, %p575_p5 }
  0x14   :  { %585 = shalt.err (!%p582_p9)
}
  0x15   :  { %29 = dma.hbm_to_vmem [thread:$0]  %s814_s1, 32, %s27_s12, [#allocation6]  }
  0x16   :  { %606 = dma.done.wait [#allocation3], 32  }
  0x17   :  { %607 = vsyncadd [#allocation3], 4294967264 }
  0x18   :  { %608 = dma.done.wait [#allocation6], 32  }
  0x19   :  { %609 = vsyncadd [#allocation6], 4294967264  ;;  %v614_v0 = vmov 1   ;;  %v615_v1 = vmov 0   ;;  %v661_v2 = vld [vmem:[#allocation5] sm:$0x3] }
  0x1a   :  { %480 = vset.pattern.permute.xlu1 %v614_v0  ;;  %479 = vset.pattern.permute.xlu0 %v615_v1  ;;  %v616_v3 = vmov 2   ;;  %v617_v4 = vmov 3   ;;  %v618_v5 = vmov 4   ;;  %v619_v6 = vmov 5   ;;  %v674_v8 = vld [vmem:[#allocation2] sm:$0x3] }
  0x1b   :  { %53 = vperm.xlu1 %480, %v661_v2   ;;  %40 = vperm.xlu0 %479, %v661_v2   ;;  %v620_v7 = vmov 6   ;;  %vm48_vm0 = vcmask 123904   ;;  %v621_v51 = vmov 7   ;;  %vm232_vm1 = vcmask 7168   ;;  %s630_s0 = smov 16   ;;  %s631_s1 = smov 32  }
  0x1c   :  { %vm234_vm2 = vcmask 15360   ;;  %vm236_vm3 = vcmask 23552   ;;  %vm238_vm4 = vcmask 31744   ;;  %vm240_vm5 = vcmask 39936   ;;  %s632_s19 = smov 48   ;;  %s633_s20 = smov 64  }
  0x1d   :  { %vm242_vm6 = vcmask 48128   ;;  %vm244_vm7 = vcmask 56320   ;;  %vm246_vm8 = vcmask 64512   ;;  %vm248_vm9 = vcmask 72704   ;;  %s634_s21 = smov 80   ;;  %s635_s22 = smov 112  }
  0x1e   :  { %vm250_vm10 = vcmask 80896   ;;  %vm252_vm11 = vcmask 89088   ;;  %vm254_vm12 = vcmask 97280   ;;  %vm256_vm13 = vcmask 105472   ;;  %s636_s23 = smov 96   ;;  %s637_s24 = smov [#allocation7]  }
  0x1f   :  { %481 = vset.pattern.permute.xlu0 %v616_v3  ;;  %482 = vset.pattern.permute.xlu1 %v617_v4  ;;  %vm258_vm14 = vcmask 113664   ;;  %vm260_vm15 = vcmask 121856   ;;  %s442_s25 = sshll.u32 %s637_s24, 4  ;;  %s443_s25 = int_to_ptr.vmem [resolvable:$true] %s442_s25 }
  0x20   :  { %65 = vperm.xlu0 %481, %v661_v2   ;;  %77 = vperm.xlu1 %482, %v661_v2   ;;  %s586_s26 = scalar_lea.vmem %s443_s25, 64  ;;  %p591_p11 = scmp.lt.s32.totalorder %s443_s25, %s443_s25 }
  0x21   :  { %p587_p10 = scmp.ne.s32.totalorder %s443_s25, %s586_s26  ;;  %p592_p12 = scmp.lt.s32.totalorder %s586_s26, %s586_s26 }
  0x23   :  { %p593_p13 = por %p592_p12, %p591_p11 }
  0x24   :  { %483 = vset.pattern.permute.xlu0 %v618_v5  ;;  %484 = vset.pattern.permute.xlu1 %v619_v6 }
  0x25   :  { %89 = vperm.xlu0 %483, %v661_v2   ;;  %101 = vperm.xlu1 %484, %v661_v2   ;;  %p594_p0 = pnand %p593_p13, %p587_p10 }
  0x29   :  { %485 = vset.pattern.permute.xlu0 %v620_v7  ;;  %486 = vset.pattern.permute.xlu1 %v621_v51 }
  0x96   :  { %v54_v9 = vpop.permute.xlu1 %53  ;;  %v41_v10 = vpop.permute.xlu0 %40 }
  0x97   :  { %v56_v11 = vsub.f32 %v674_v8, %v54_v9  ;;  %v43_v12 = vsub.f32 %v674_v8, %v41_v10 }
  0x99   :  { %v57_v13 = vand.u32 2147483647, %v56_v11  ;;  %v44_v14 = vand.u32 2147483647, %v43_v12 }
  0x9b   :  { %v58_v15 = vmul.f32 -1.0, %v57_v13  ;;  %v45_v16 = vmul.f32 -1.0, %v44_v14  ;;  %v66_v17 = vpop.permute.xlu0 %65  ;;  %v78_v18 = vpop.permute.xlu1 %77  ;;  %v622_v13 = vmov 8   ;;  %v623_v14 = vmov 9  }
  0x9c   :  { %v68_v19 = vsub.f32 %v674_v8, %v66_v17  ;;  %v80_v20 = vsub.f32 %v674_v8, %v78_v18 }
  0x9d   :  { %v59_v21 = vmul.f32 1.442695, %v58_v15  ;;  %v46_v22 = vmul.f32 1.442695, %v45_v16 }
  0x9e   :  { %v69_v23 = vand.u32 2147483647, %v68_v19  ;;  %v81_v24 = vand.u32 2147483647, %v80_v20 }
  0x9f   :  { %512 = vpow2.f32 %v59_v21 }
  0xa0   :  { %514 = vpow2.f32 %v46_v22  ;;  %v70_v25 = vmul.f32 -1.0, %v69_v23  ;;  %v82_v26 = vmul.f32 -1.0, %v81_v24  ;;  %v90_v27 = vpop.permute.xlu0 %89  ;;  %v102_v28 = vpop.permute.xlu1 %101 }
  0xa1   :  { %v92_v29 = vsub.f32 %v674_v8, %v90_v27  ;;  %v104_v30 = vsub.f32 %v674_v8, %v102_v28 }
  0xa2   :  { %v71_v31 = vmul.f32 1.442695, %v70_v25  ;;  %v83_v32 = vmul.f32 1.442695, %v82_v26 }
  0xa3   :  { %v93_v33 = vand.u32 2147483647, %v92_v29  ;;  %v105_v34 = vand.u32 2147483647, %v104_v30 }
  0xa4   :  { %516 = vpow2.f32 %v71_v31 }
  0xa5   :  { %518 = vpow2.f32 %v83_v32  ;;  %v94_v35 = vmul.f32 -1.0, %v93_v33  ;;  %v106_v36 = vmul.f32 -1.0, %v105_v34  ;;  %v624_v33 = vmov 10  }
  0xa6   :  { %v625_v34 = vmov 11  }
  0xa7   :  { %v95_v37 = vmul.f32 1.442695, %v94_v35  ;;  %v107_v38 = vmul.f32 1.442695, %v106_v36  ;;  %v626_v35 = vmov 12   ;;  %v627_v36 = vmov 13  }
  0xa9   :  { %520 = vpow2.f32 %v95_v37  ;;  %v628_v37 = vmov 14  }
  0xaa   :  { %522 = vpow2.f32 %v107_v38 }
  0xac   :  { %v682_v39 = vpop.eup %512 }
  0xad   :  { %v684_v40 = vpop.eup %514  ;;  %v61_v41 = vsel %vm48_vm0, %v682_v39, 0.0 }
  0xae   :  { %62 = vadd.xlane.f32.xlu1 %v61_v41  ;;  %v49_v42 = vsel %vm48_vm0, %v684_v40, 0.0 }
  0xaf   :  { %50 = vadd.xlane.f32.xlu0 %v49_v42 }
  0xb1   :  { %v690_v43 = vpop.eup %516 }
  0xb2   :  { %v692_v44 = vpop.eup %518  ;;  %v73_v45 = vsel %vm48_vm0, %v690_v43, 0.0 }
  0xb3   :  { %74 = vadd.xlane.f32.xlu1 %v73_v45  ;;  %v85_v46 = vsel %vm48_vm0, %v692_v44, 0.0 }
  0xb6   :  { %v698_v47 = vpop.eup %520 }
  0xb7   :  { %v700_v48 = vpop.eup %522  ;;  %86 = vadd.xlane.f32.xlu1 %v85_v46  ;;  %v97_v49 = vsel %vm48_vm0, %v698_v47, 0.0 }
  0xb8   :  { %98 = vadd.xlane.f32.xlu0 %v97_v49  ;;  %v109_v50 = vsel %vm48_vm0, %v700_v48, 0.0 }
  0xbb   :  { %110 = vadd.xlane.f32.xlu1 %v109_v50 }
  0xce   :  { %113 = vperm.xlu0 %485, %v661_v2  }
  0xd2   :  { %488 = vset.pattern.permute.xlu0 %v623_v14 }
 0x137   :  { %v63_v52 = vpop.xlane.xlu1 %62 }
 0x138   :  { %v51_v53 = vpop.xlane.xlu0 %50 }
 0x139   :  { %v233_v54 = vsel %vm232_vm1, %v51_v53, %v63_v52  ;;  %vm405_vm1 = vcmask 261120  }
 0x13c   :  { %v75_v55 = vpop.xlane.xlu1 %74 }
 0x13d   :  { %v235_v56 = vsel %vm234_vm2, %v233_v54, %v75_v55  ;;  %vm407_vm2 = vcmask 392192  }
 0x140   :  { %v87_v57 = vpop.xlane.xlu1 %86 }
 0x141   :  { %v237_v58 = vsel %vm236_vm3, %v235_v56, %v87_v57  ;;  %v99_v59 = vpop.xlane.xlu0 %98  ;;  %vm409_vm3 = vcmask 523264  }
 0x142   :  { %v239_v60 = vsel %vm238_vm4, %v237_v58, %v99_v59  ;;  %vm411_vm4 = vcmask 654336  }
 0x144   :  { %v111_v15 = vpop.xlane.xlu1 %110 }
 0x145   :  { %v241_v16 = vsel %vm240_vm5, %v239_v60, %v111_v15  ;;  %v629_v60 = vmov 15   ;;  %vm413_vm5 = vcmask 785408  }
 0x149   :  { %v114_v61 = vpop.permute.xlu0 %113 }
 0x14a   :  { %v116_v62 = vsub.f32 %v674_v8, %v114_v61 }
 0x14c   :  { %v117_v63 = vand.u32 2147483647, %v116_v62 }
 0x14e   :  { %v118_v9 = vmul.f32 -1.0, %v117_v63 }
 0x150   :  { %v119_v10 = vmul.f32 1.442695, %v118_v9 }
 0x152   :  { %524 = vpow2.f32 %v119_v10 }
 0x15f   :  { %v709_v11 = vpop.eup %524 }
 0x160   :  { %v121_v12 = vsel %vm48_vm0, %v709_v11, 0.0 }
 0x161   :  { %122 = vadd.xlane.f32.xlu1 %v121_v12 }
 0x172   :  { %125 = vperm.xlu1 %486, %v661_v2  }
 0x176   :  { %487 = vset.pattern.permute.xlu1 %v622_v13 }
 0x177   :  { %137 = vperm.xlu1 %487, %v661_v2  }
 0x17b   :  { %489 = vset.pattern.permute.xlu1 %v624_v33 }
 0x1ea   :  { %v123_v17 = vpop.xlane.xlu1 %122 }
 0x1eb   :  { %v243_v18 = vsel %vm242_vm6, %v241_v16, %v123_v17  ;;  %vm415_vm6 = vcmask 916480  }
 0x1ee   :  { %v126_v19 = vpop.permute.xlu1 %125 }
 0x1ef   :  { %v128_v20 = vsub.f32 %v674_v8, %v126_v19 }
 0x1f1   :  { %v129_v21 = vand.u32 2147483647, %v128_v20 }
 0x1f2   :  { %v138_v22 = vpop.permute.xlu1 %137 }
 0x1f3   :  { %v130_v23 = vmul.f32 -1.0, %v129_v21  ;;  %v140_v24 = vsub.f32 %v674_v8, %v138_v22 }
 0x1f5   :  { %v131_v25 = vmul.f32 1.442695, %v130_v23  ;;  %v141_v26 = vand.u32 2147483647, %v140_v24 }
 0x1f7   :  { %526 = vpow2.f32 %v131_v25  ;;  %v142_v27 = vmul.f32 -1.0, %v141_v26 }
 0x1f9   :  { %v143_v28 = vmul.f32 1.442695, %v142_v27 }
 0x1fb   :  { %528 = vpow2.f32 %v143_v28 }
 0x204   :  { %v719_v29 = vpop.eup %526 }
 0x205   :  { %v133_v30 = vsel %vm48_vm0, %v719_v29, 0.0 }
 0x206   :  { %134 = vadd.xlane.f32.xlu0 %v133_v30 }
 0x208   :  { %v723_v31 = vpop.eup %528 }
 0x209   :  { %v145_v32 = vsel %vm48_vm0, %v723_v31, 0.0 }
 0x20a   :  { %146 = vadd.xlane.f32.xlu1 %v145_v32 }
 0x21c   :  { %149 = vperm.xlu0 %488, %v661_v2  }
 0x220   :  { %490 = vset.pattern.permute.xlu0 %v625_v34 }
 0x221   :  { %173 = vperm.xlu0 %490, %v661_v2  }
 0x225   :  { %491 = vset.pattern.permute.xlu0 %v626_v35 }
 0x226   :  { %185 = vperm.xlu0 %491, %v661_v2  }
 0x22a   :  { %492 = vset.pattern.permute.xlu0 %v627_v36 }
 0x22b   :  { %197 = vperm.xlu0 %492, %v661_v2  }
 0x22f   :  { %493 = vset.pattern.permute.xlu0 %v628_v37 }
 0x230   :  { %209 = vperm.xlu0 %493, %v661_v2  }
 0x234   :  { %495 = vset.pattern.permute.xlu0 %v615_v1 }
 0x28f   :  { %v135_v38 = vpop.xlane.xlu0 %134 }
 0x290   :  { %v245_v41 = vsel %vm244_vm7, %v243_v18, %v135_v38 }
 0x293   :  { %v147_v24 = vpop.xlane.xlu1 %146 }
 0x294   :  { %v247_v25 = vsel %vm246_vm8, %v245_v41, %v147_v24 }
 0x297   :  { %v150_v42 = vpop.permute.xlu0 %149 }
 0x298   :  { %v152_v45 = vsub.f32 %v674_v8, %v150_v42 }
 0x29a   :  { %v153_v46 = vand.u32 2147483647, %v152_v45 }
 0x29c   :  { %v154_v49 = vmul.f32 -1.0, %v153_v46  ;;  %v174_v54 = vpop.permute.xlu0 %173 }
 0x29d   :  { %v176_v55 = vsub.f32 %v674_v8, %v174_v54 }
 0x29e   :  { %v155_v50 = vmul.f32 1.442695, %v154_v49 }
 0x29f   :  { %v177_v1 = vand.u32 2147483647, %v176_v55 }
 0x2a0   :  { %530 = vpow2.f32 %v155_v50 }
 0x2a1   :  { %v178_v56 = vmul.f32 -1.0, %v177_v1  ;;  %v186_v61 = vpop.permute.xlu0 %185 }
 0x2a2   :  { %v188_v49 = vsub.f32 %v674_v8, %v186_v61 }
 0x2a3   :  { %v179_v57 = vmul.f32 1.442695, %v178_v56 }
 0x2a4   :  { %v189_v41 = vand.u32 2147483647, %v188_v49 }
 0x2a5   :  { %532 = vpow2.f32 %v179_v57 }
 0x2a6   :  { %v198_v62 = vpop.permute.xlu0 %197  ;;  %v190_v50 = vmul.f32 -1.0, %v189_v41 }
 0x2a7   :  { %v200_v63 = vsub.f32 %v674_v8, %v198_v62 }
 0x2a9   :  { %v201_v9 = vand.u32 2147483647, %v200_v63 }
 0x2ab   :  { %v210_v10 = vpop.permute.xlu0 %209  ;;  %v202_v12 = vmul.f32 -1.0, %v201_v9 }
 0x2ac   :  { %v212_v15 = vsub.f32 %v674_v8, %v210_v10 }
 0x2ad   :  { %v739_v52 = vpop.eup %530  ;;  %v203_v16 = vmul.f32 1.442695, %v202_v12 }
 0x2ae   :  { %v157_v53 = vsel %vm48_vm0, %v739_v52, 0.0  ;;  %v213_v17 = vand.u32 2147483647, %v212_v15 }
 0x2af   :  { %158 = vadd.xlane.f32.xlu1 %v157_v53  ;;  %534 = vpow2.f32 %v203_v16  ;;  %v191_v53 = vmul.f32 1.442695, %v190_v50 }
 0x2b0   :  { %v214_v18 = vmul.f32 -1.0, %v213_v17 }
 0x2b2   :  { %v745_v58 = vpop.eup %532  ;;  %v215_v19 = vmul.f32 1.442695, %v214_v18 }
 0x2b3   :  { %v181_v59 = vsel %vm48_vm0, %v745_v58, 0.0 }
 0x2b4   :  { %182 = vadd.xlane.f32.xlu0 %v181_v59  ;;  %536 = vpow2.f32 %v215_v19 }
 0x2bc   :  { %v752_v20 = vpop.eup %534 }
 0x2bd   :  { %v205_v21 = vsel %vm48_vm0, %v752_v20, 0.0 }
 0x2be   :  { %206 = vadd.xlane.f32.xlu0 %v205_v21 }
 0x2c0   :  { %161 = vperm.xlu1 %489, %v661_v2  }
 0x2c1   :  { %v756_v22 = vpop.eup %536 }
 0x2c2   :  { %v217_v23 = vsel %vm48_vm0, %v756_v22, 0.0 }
 0x2c3   :  { %218 = vadd.xlane.f32.xlu0 %v217_v23 }
 0x2c4   :  { %494 = vset.pattern.permute.xlu1 %v629_v60 }
 0x338   :  { %v159_v26 = vpop.xlane.xlu1 %158 }
 0x339   :  { %v249_v27 = vsel %vm248_vm9, %v247_v25, %v159_v26 }
 0x33c   :  { %v162_v28 = vpop.permute.xlu1 %161 }
 0x33d   :  { %v164_v30 = vsub.f32 %v674_v8, %v162_v28  ;;  %v183_v9 = vpop.xlane.xlu0 %182 }
 0x33f   :  { %v165_v32 = vand.u32 2147483647, %v164_v30 }
 0x341   :  { %v166_v38 = vmul.f32 -1.0, %v165_v32 }
 0x343   :  { %v167_v42 = vmul.f32 1.442695, %v166_v38 }
 0x345   :  { %538 = vpow2.f32 %v167_v42 }
 0x346   :  { %540 = vpow2.f32 %v191_v53 }
 0x347   :  { %v207_v10 = vpop.xlane.xlu0 %206 }
 0x34c   :  { %v219_v17 = vpop.xlane.xlu0 %218 }
 0x352   :  { %v761_v45 = vpop.eup %538 }
 0x353   :  { %v169_v46 = vsel %vm48_vm0, %v761_v45, 0.0  ;;  %v768_v54 = vpop.eup %540 }
 0x354   :  { %170 = vadd.xlane.f32.xlu1 %v169_v46  ;;  %v193_v55 = vsel %vm48_vm0, %v768_v54, 0.0 }
 0x365   :  { %221 = vperm.xlu1 %494, %v661_v2  }
 0x369   :  { %496 = vset.pattern.permute.xlu1 %v614_v0 }
 0x389   :  { %194 = vadd.xlane.f32.xlu1 %v193_v55 }
 0x3dd   :  { %v171_v1 = vpop.xlane.xlu1 %170 }
 0x3de   :  { %v251_v56 = vsel %vm250_vm10, %v249_v27, %v171_v1 }
 0x3df   :  { %v253_v15 = vsel %vm252_vm11, %v251_v56, %v183_v9 }
 0x3e1   :  { %v222_v57 = vpop.permute.xlu1 %221 }
 0x3e2   :  { %v224_v2 = vsub.f32 %v674_v8, %v222_v57 }
 0x3e4   :  { %v225_v59 = vand.u32 2147483647, %v224_v2 }
 0x3e6   :  { %v226_v61 = vmul.f32 -1.0, %v225_v59 }
 0x3e8   :  { %v227_v62 = vmul.f32 1.442695, %v226_v61 }
 0x3ea   :  { %542 = vpow2.f32 %v227_v62 }
 0x3f7   :  { %v773_v0 = vpop.eup %542 }
 0x3f8   :  { %v229_v63 = vsel %vm48_vm0, %v773_v0, 0.0  ;;  %vm403_vm0 = vcmask 130048  }
 0x3f9   :  { %230 = vadd.xlane.f32.xlu0 %v229_v63 }
 0x412   :  { %v195_v12 = vpop.xlane.xlu1 %194 }
 0x413   :  { %v255_v16 = vsel %vm254_vm12, %v253_v15, %v195_v12 }
 0x414   :  { %v257_v8 = vsel %vm256_vm13, %v255_v16, %v207_v10 }
 0x415   :  { %v259_v18 = vsel %vm258_vm14, %v257_v8, %v219_v17 }
 0x482   :  { %v231_v19 = vpop.xlane.xlu0 %230 }
 0x483   :  { %v261_v21 = vsel %vm260_vm15, %v259_v18, %v231_v19 }
 0x484   :  { %544 = vrcp.f32 %v261_v21 }
 0x491   :  { %v545_v23 = vpop.eup %544 }
 0x492   :  { %v263_v24 = vmul.f32 %v545_v23, %v261_v21 }
 0x494   :  { %v264_v25 = vsub.f32 2.0, %v263_v24 }
 0x496   :  { %v265_v26 = vmul.f32 %v545_v23, %v264_v25 }
 0x498   :  { %273 = vperm.xlu1 %496, %v265_v26   ;;  %268 = vperm.xlu0 %495, %v265_v26  }
 0x49c   :  { %497 = vset.pattern.permute.xlu1 %v616_v3  ;;  %502 = vset.pattern.permute.xlu0 %v621_v51 }
 0x49d   :  { %278 = vperm.xlu1 %497, %v265_v26   ;;  %303 = vperm.xlu0 %502, %v265_v26  }
 0x4a1   :  { %498 = vset.pattern.permute.xlu1 %v617_v4  ;;  %505 = vset.pattern.permute.xlu0 %v624_v33 }
 0x4a2   :  { %283 = vperm.xlu1 %498, %v265_v26   ;;  %318 = vperm.xlu0 %505, %v265_v26  }
 0x4a6   :  { %499 = vset.pattern.permute.xlu1 %v618_v5  ;;  %508 = vset.pattern.permute.xlu0 %v627_v36 }
 0x4a7   :  { %288 = vperm.xlu1 %499, %v265_v26   ;;  %333 = vperm.xlu0 %508, %v265_v26  }
 0x4ab   :  { %500 = vset.pattern.permute.xlu1 %v619_v6  ;;  %511 = vset.pattern.permute.xlu0 %v629_v60 }
 0x4ac   :  { %293 = vperm.xlu1 %500, %v265_v26  }
 0x4b0   :  { %501 = vset.pattern.permute.xlu1 %v620_v7 }
 0x4b1   :  { %298 = vperm.xlu1 %501, %v265_v26  }
 0x4b5   :  { %503 = vset.pattern.permute.xlu1 %v622_v13 }
 0x4b6   :  { %308 = vperm.xlu1 %503, %v265_v26  }
 0x4ba   :  { %504 = vset.pattern.permute.xlu1 %v623_v14 }
 0x4bb   :  { %313 = vperm.xlu1 %504, %v265_v26  }
 0x4bf   :  { %506 = vset.pattern.permute.xlu1 %v625_v34 }
 0x4c0   :  { %323 = vperm.xlu1 %506, %v265_v26  }
 0x4c4   :  { %507 = vset.pattern.permute.xlu1 %v626_v35 }
 0x4c5   :  { %328 = vperm.xlu1 %507, %v265_v26  }
 0x4c9   :  { %509 = vset.pattern.permute.xlu1 %v628_v37 }
 0x4ca   :  { %338 = vperm.xlu1 %509, %v265_v26  }
 0x4ce   :  { %510 = vset.pattern.permute.xlu1 %v629_v60 }
 0x4cf   :  { %343 = vperm.xlu1 %510, %v265_v26  }
 0x513   :  { %v274_v3 = vpop.permute.xlu1 %273  ;;  %v269_v13 = vpop.permute.xlu0 %268 }
 0x514   :  { %v276_v4 = vmul.f32 %v682_v39, %v274_v3 }
 0x516   :  { %348 = vrot.lane.b32.xlu0 %v276_v4, %s630_s0 }
 0x518   :  { %v279_v5 = vpop.permute.xlu1 %278  ;;  %v304_v39 = vpop.permute.xlu0 %303 }
 0x519   :  { %v281_v6 = vmul.f32 %v690_v43, %v279_v5  ;;  %v306_v43 = vmul.f32 %v719_v29, %v304_v39 }
 0x51b   :  { %352 = vrot.lane.b32.xlu1 %v281_v6, %s631_s1 }
 0x51d   :  { %v284_v7 = vpop.permute.xlu1 %283  ;;  %v319_v37 = vpop.permute.xlu0 %318 }
 0x51e   :  { %v286_v51 = vmul.f32 %v692_v44, %v284_v7 }
 0x520   :  { %356 = vrot.lane.b32.xlu0 %v286_v51, %s632_s19 }
 0x522   :  { %v289_v14 = vpop.permute.xlu1 %288  ;;  %v334_v30 = vpop.permute.xlu0 %333 }
 0x523   :  { %v291_v33 = vmul.f32 %v698_v47, %v289_v14  ;;  %v321_v47 = vmul.f32 %v761_v45, %v319_v37 }
 0x525   :  { %360 = vrot.lane.b32.xlu1 %v291_v33, %s633_s20 }
 0x527   :  { %v294_v34 = vpop.permute.xlu1 %293 }
 0x528   :  { %v296_v35 = vmul.f32 %v700_v48, %v294_v34 }
 0x52a   :  { %364 = vrot.lane.b32.xlu0 %v296_v35, %s634_s21 }
 0x52c   :  { %v299_v36 = vpop.permute.xlu1 %298 }
 0x52d   :  { %v301_v44 = vmul.f32 %v709_v11, %v299_v36  ;;  %v336_v11 = vmul.f32 %v752_v20, %v334_v30 }
 0x52e   :  { %372 = vrot.lane.b32.xlu0 %v306_v43, %s635_s22 }
 0x52f   :  { %368 = vrot.lane.b32.xlu1 %v301_v44, %s636_s23 }
 0x531   :  { %v309_v60 = vpop.permute.xlu1 %308 }
 0x532   :  { %380 = vrot.lane.b32.xlu0 %v321_v47, %s631_s1 }
 0x536   :  { %v314_v27 = vpop.permute.xlu1 %313 }
 0x537   :  { %v316_v28 = vmul.f32 %v739_v52, %v314_v27 }
 0x539   :  { %376 = vrot.lane.b32.xlu1 %v316_v28, %s630_s0 }
 0x53b   :  { %v324_v48 = vpop.permute.xlu1 %323 }
 0x53c   :  { %v326_v29 = vmul.f32 %v745_v58, %v324_v48 }
 0x53e   :  { %384 = vrot.lane.b32.xlu1 %v326_v29, %s632_s19 }
 0x540   :  { %v329_v32 = vpop.permute.xlu1 %328 }
 0x541   :  { %v331_v38 = vmul.f32 %v768_v54, %v329_v32  ;;  %v311_v54 = vmul.f32 %v723_v31, %v309_v60 }
 0x542   :  { %392 = vrot.lane.b32.xlu1 %v336_v11, %s634_s21 }
 0x543   :  { %388 = vrot.lane.b32.xlu0 %v331_v38, %s633_s20 }
 0x545   :  { %v339_v42 = vpop.permute.xlu1 %338 }
 0x546   :  { %v341_v45 = vmul.f32 %v756_v22, %v339_v42  ;;  %v271_v22 = vmul.f32 %v684_v40, %v269_v13 }
 0x548   :  { %396 = vrot.lane.b32.xlu0 %v341_v45, %s636_s23 }
 0x54a   :  { %v344_v46 = vpop.permute.xlu1 %343 }
 0x54b   :  { %v346_v52 = vmul.f32 %v773_v0, %v344_v46 }
 0x54d   :  { %400 = vrot.lane.b32.xlu1 %v346_v52, %s635_s22 }
 0x588   :  { %v349_v49 = vpop.permute.xlu0 %348 }
 0x589   :  { %v404_v61 = vsel %vm403_vm0, %v271_v22, %v349_v49 }
 0x58d   :  { %v353_v58 = vpop.permute.xlu1 %352 }
 0x58e   :  { %v406_v62 = vsel %vm405_vm1, %v404_v61, %v353_v58 }
 0x592   :  { %v357_v41 = vpop.permute.xlu0 %356 }
 0x593   :  { %v408_v63 = vsel %vm407_vm2, %v406_v62, %v357_v41 }
 0x597   :  { %v361_v53 = vpop.permute.xlu1 %360 }
 0x598   :  { %v410_v10 = vsel %vm409_vm3, %v408_v63, %v361_v53 }
 0x59c   :  { %v365_v50 = vpop.permute.xlu0 %364 }
 0x59d   :  { %v412_v31 = vsel %vm411_vm4, %v410_v10, %v365_v50 }
 0x5a0   :  { %v373_v20 = vpop.permute.xlu0 %372 }
 0x5a1   :  { %v369_v55 = vpop.permute.xlu1 %368 }
 0x5a2   :  { %v414_v17 = vsel %vm413_vm5, %v412_v31, %v369_v55 }
 0x5a3   :  { %v416_v19 = vsel %vm415_vm6, %v414_v17, %v373_v20 }
 0x5a4   :  { %v381_v56 = vpop.permute.xlu0 %380 }
 0x5ab   :  { %v377_v1 = vpop.permute.xlu1 %376 }
 0x5ac   :  { %v417_v2 = vsel %vm403_vm0, %v311_v54, %v377_v1 }
 0x5ad   :  { %v418_v0 = vsel %vm405_vm1, %v417_v2, %v381_v56 }
 0x5b0   :  { %v385_v57 = vpop.permute.xlu1 %384 }
 0x5b1   :  { %v419_v9 = vsel %vm407_vm2, %v418_v0, %v385_v57 }
 0x5b4   :  { %v393_v12 = vpop.permute.xlu1 %392 }
 0x5b5   :  { %v389_v59 = vpop.permute.xlu0 %388 }
 0x5b6   :  { %v420_v15 = vsel %vm409_vm3, %v419_v9, %v389_v59 }
 0x5b7   :  { %v421_v40 = vsel %vm411_vm4, %v420_v15, %v393_v12 }
 0x5ba   :  { %v397_v16 = vpop.permute.xlu0 %396 }
 0x5bb   :  { %v422_v8 = vsel %vm413_vm5, %v421_v40, %v397_v16 }
 0x5bf   :  { %v401_v18 = vpop.permute.xlu1 %400 }
 0x5c0   :  { %v423_v21 = vsel %vm415_vm6, %v422_v8, %v401_v18 }
 0x5c1   :  { %v426_v23 = vcombine.low %v416_v19, %v423_v21 }
 0x5c3   :  { %452 = vst.sshfl [vmem:[#allocation7] sm:$0x33 pattern:$0x76325410] %v426_v23 }
 0x5c4   :  { %597 = shalt.err (!%p594_p0)
}
 0x5c5   :  { %445 = dma.vmem_to_hbm [thread:$0]  %s443_s25, 64, %s815_s2, [#allocation4]  }
 0x5c6   :  { %610 = dma.done.wait [#allocation4], 64  }
 0x5c7   :  { %611 = vsyncadd [#allocation4], 4294967232 }
 0x5c8   :  { %449 = vsyncpa [#allocation3], 1 }
 0x5c9   :  { %450 = vsyncpa [#allocation6], 1 }
 0x5ca   :  { %451 = vsyncpa [#allocation4], 1 }

</bundles_post_ra>
